<compile_context>
chip_gen: v6e
topology: v6e:2x2x1
jax: 0.10.0
libtpu: 0.0.40
codegen_flags: <defaults>
</compile_context>

<pallas_src>
import functools

import jax
import jax.numpy as jnp
from jax.experimental import pallas as pl
from jax.experimental.pallas import tpu as pltpu


_INV_SQRT2 = 0.7071067811865475       # 1/sqrt(2)  (mul, not divide)
_SQRT_2_OVER_PI = 0.7978845608028654  # sqrt(2/pi)


def _gelu_f32(x, approximate):
    if approximate:
        # tanh form: one EUP op per element instead of the long erf polynomial.
        inner = _SQRT_2_OVER_PI * (x + 0.044715 * x * x * x)
        return 0.5 * x * (1.0 + jnp.tanh(inner))
    # torch.nn.GELU() default: exact erf formulation, computed in f32.
    return 0.5 * x * (1.0 + jax.lax.erf(x * _INV_SQRT2))


def _projection_kernel(x_ref, w1_ref, b1_ref, w2_ref, b2_ref, o_ref, *,
                       approximate_gelu):
    # First linear: (tm, K) @ (K, H); cast the activation tile to the weight
    # dtype (bf16 by default) to hit the fast MXU path, accumulate in f32.
    x = x_ref[...].astype(w1_ref.dtype)
    h = jnp.dot(x, w1_ref[...], preferred_element_type=jnp.float32)
    h = h + b1_ref[...].astype(jnp.float32)
    h = _gelu_f32(h, approximate_gelu)          # epilogue math stays in f32
    # Second linear: (tm, H) @ (H, H).
    out = jnp.dot(h.astype(w2_ref.dtype), w2_ref[...],
                  preferred_element_type=jnp.float32)
    out = out + b2_ref[...].astype(jnp.float32)
    o_ref[...] = out.astype(o_ref.dtype)


def _round_up(v, m):
    return (v + m - 1) // m * m


@functools.lru_cache(maxsize=1)
def _pick_vmem_limit_bytes():
    # ~48 MiB is safe on v7x (64 MiB per TC); v5e/v6e (128 MiB) get a larger
    # budget so bigger tiles / deeper buffering are not artificially blocked.
    default = 48 * 1024 * 1024
    try:
        cap = getattr(pltpu.get_tpu_info(), "vmem_capacity_bytes", None)
        if not cap:
            return default
        return max(default, min(int(cap) * 3 // 4, 112 * 1024 * 1024))
    except Exception:
        return default


@functools.partial(
    jax.jit, static_argnames=("tm", "use_bf16_weights", "approximate_gelu"))
def projection_module(x, w1, b1, w2, b2, *, tm=512, use_bf16_weights=True,
                      approximate_gelu=False):
    """x: (..., K) -> (..., H). Two matmuls + GELU fused in one Pallas kernel."""
    K = x.shape[-1]
    H = w2.shape[-1]
    lead_shape = x.shape[:-1]
    x2d = x.reshape(-1, K)
    M = x2d.shape[0]

    # bf16 weights -> bf16 MXU, half the resident weight VMEM / weight DMA.
    wdt = jnp.bfloat16 if use_bf16_weights else w1.dtype
    w1c = w1.astype(wdt)
    w2c = w2.astype(wdt)
    b1_2d = b1.reshape(1, H).astype(jnp.float32)
    b2_2d = b2.reshape(1, H).astype(jnp.float32)

    # Adaptive token tile: don't pad a tiny M up to a huge tile, and when M
    # spans several tiles pick the smallest tile preserving the grid count
    # (minimal padding; sublane granularity is 8 rows).
    grid_m = pl.cdiv(M, tm)
    tm_eff = min(tm, _round_up(pl.cdiv(M, grid_m), 8))
    grid_m = pl.cdiv(M, tm_eff)
    M_pad = grid_m * tm_eff
    if M_pad != M:
        x2d = jnp.pad(x2d, ((0, M_pad - M), (0, 0)))

    def _nbytes(a):
        return a.size * jnp.dtype(a.dtype).itemsize

    cost = pl.CostEstimate(
        flops=2 * M_pad * (K * H + H * H),
        transcendentals=M_pad * H,  # one erf/tanh per hidden activation
        bytes_accessed=(_nbytes(x2d) + _nbytes(w1c) + _nbytes(w2c)
                        + _nbytes(b1_2d) + _nbytes(b2_2d)
                        + M_pad * H * jnp.dtype(x.dtype).itemsize),
    )

    # Resident operands: constant index_map, single-buffered (fetched once;
    # no point paying 2x VMEM for blocks whose index never changes).
    def _resident(shape):
        return pl.BlockSpec(shape, lambda i: (0, 0),
                            pipeline_mode=pl.Buffered(1))

    kernel = functools.partial(_projection_kernel,
                               approximate_gelu=approximate_gelu)

    out = pl.pallas_call(
        kernel,
        out_shape=jax.ShapeDtypeStruct((M_pad, H), x.dtype),
        grid_spec=pltpu.PrefetchScalarGridSpec(
            num_scalar_prefetch=0,
            grid=(grid_m,),
            in_specs=[
                pl.BlockSpec((tm_eff, K), lambda i: (i, 0)),  # x tile (pipelined)
                _resident((K, H)),                            # W1
                _resident((1, H)),                            # b1
                _resident((H, H)),                            # W2
                _resident((1, H)),                            # b2
            ],
            out_specs=pl.BlockSpec((tm_eff, H), lambda i: (i, 0)),
        ),
        compiler_params=pltpu.CompilerParams(
            dimension_semantics=("parallel",),  # M-tiles shard across TCs (v7x)
            vmem_limit_bytes=_pick_vmem_limit_bytes(),
        ),
        cost_estimate=cost,
    )(x2d, w1c, b1_2d, w2c, b2_2d)

    if M_pad != M:
        out = out[:M]
    return out.reshape(*lead_shape, H)


def _reference(x2d, w1, b1, w2, b2, approximate=False):
    # Same math as the kernel (weights already in the dtype the kernel uses).
    h = jnp.dot(x2d.astype(w1.dtype), w1, preferred_element_type=jnp.float32)
    h = h + b1.astype(jnp.float32)
    h = _gelu_f32(h, approximate)
    out = jnp.dot(h.astype(w2.dtype), w2, preferred_element_type=jnp.float32)
    out = out + b2.astype(jnp.float32)
    return out.astype(x2d.dtype)


if __name__ == "__main__":
    # Small analogues of mm_hidden_size=1152 / hidden_size=1536.
    mm_hidden_size = 256
    hidden_size = 128

    key = jax.random.PRNGKey(0)
    kx1, kx2, k1, k2, k3, k4 = jax.random.split(key, 6)

    w1 = jax.random.normal(k1, (mm_hidden_size, hidden_size), jnp.float32) * (
        1.0 / jnp.sqrt(mm_hidden_size))
    b1 = jax.random.normal(k2, (hidden_size,), jnp.float32) * 0.02
    w2 = jax.random.normal(k3, (hidden_size, hidden_size), jnp.float32) * (
        1.0 / jnp.sqrt(hidden_size))
    b2 = jax.random.normal(k4, (hidden_size,), jnp.float32) * 0.02

    w1_bf = w1.astype(jnp.bfloat16)
    w2_bf = w2.astype(jnp.bfloat16)

    # Case 1: tiny token count (batch=2, seq=8 -> M=16): adaptive tile (16),
    # single grid step, no phantom-row waste.
    x_a = jax.random.normal(kx1, (2, 8, mm_hidden_size), jnp.float32)
    y_a = jax.block_until_ready(projection_module(x_a, w1, b1, w2, b2))
    ref_a = _reference(x_a.reshape(-1, mm_hidden_size), w1_bf, b1, w2_bf, b2
                       ).reshape(2, 8, hidden_size)
    assert y_a.shape == (2, 8, hidden_size)
    assert jnp.allclose(y_a, ref_a, atol=2e-2, rtol=2e-2), \
        "mismatch vs reference (small-M path)"

    # Case 2: multi-step grid with padding (M=272, tm=128 -> 3 tiles of 96,
    # padded to 288): exercises the pipelined multi-tile + pad/slice path.
    x_b = jax.random.normal(kx2, (2, 136, mm_hidden_size), jnp.float32)
    y_b = jax.block_until_ready(
        projection_module(x_b, w1, b1, w2, b2, tm=128))
    ref_b = _reference(x_b.reshape(-1, mm_hidden_size), w1_bf, b1, w2_bf, b2
                       ).reshape(2, 136, hidden_size)
    assert jnp.allclose(y_b, ref_b, atol=2e-2, rtol=2e-2), \
        "mismatch vs reference (multi-tile path)"

    print("KERNEL_OK")
</pallas_src>

<mosaic_0001>
module attributes {stable_mosaic.version = 11 : i64} {
  func.func @_projection_kernel(%arg0: i32, %arg1: memref<16x256xf32, #tpu.memory_space<vmem>>, %arg2: memref<256x128xbf16, #tpu.memory_space<vmem>>, %arg3: memref<1x128xf32, #tpu.memory_space<vmem>>, %arg4: memref<128x128xbf16, #tpu.memory_space<vmem>>, %arg5: memref<1x128xf32, #tpu.memory_space<vmem>>, %arg6: memref<16x128xf32, #tpu.memory_space<vmem>>) attributes {dimension_semantics = [#tpu.dimension_semantics<parallel>], iteration_bounds = array<i64: 1>, scalar_prefetch = 0 : i64, scratch_operands = 0 : i64, tpu.core_type = #tpu.core_type<tc>, window_params = [{transform_indices = @transform_0, window_bounds = array<i64: 16, 256>}, {pipeline_mode = #tpu.pipeline_mode<synchronous>, transform_indices = @transform_1, window_bounds = array<i64: 256, 128>}, {pipeline_mode = #tpu.pipeline_mode<synchronous>, transform_indices = @transform_2, window_bounds = array<i64: 1, 128>}, {pipeline_mode = #tpu.pipeline_mode<synchronous>, transform_indices = @transform_3, window_bounds = array<i64: 128, 128>}, {pipeline_mode = #tpu.pipeline_mode<synchronous>, transform_indices = @transform_4, window_bounds = array<i64: 1, 128>}, {transform_indices = @transform_5, window_bounds = array<i64: 16, 128>}]} {
    %c0 = arith.constant 0 : index
    %c0_0 = arith.constant 0 : index
    %0 = vector.load %arg1[%c0, %c0_0] : memref<16x256xf32, #tpu.memory_space<vmem>>, vector<16x256xf32>
    %1 = arith.truncf %0 : vector<16x256xf32> to vector<16x256xbf16>
    %c0_1 = arith.constant 0 : index
    %c0_2 = arith.constant 0 : index
    %2 = vector.load %arg2[%c0_1, %c0_2] : memref<256x128xbf16, #tpu.memory_space<vmem>>, vector<256x128xbf16>
    %cst = arith.constant dense<0.000000e+00> : vector<16x128xf32>
    %3 = tpu.matmul %1, %2, %cst {dimension_numbers = #tpu.dot_dimension_numbers<[1], [0], [0], [1], [0, 0, 1, 1], [], []>} : vector<16x256xbf16>, vector<256x128xbf16>, vector<16x128xf32> -> vector<16x128xf32>
    %c0_3 = arith.constant 0 : index
    %c0_4 = arith.constant 0 : index
    %4 = vector.load %arg3[%c0_3, %c0_4] : memref<1x128xf32, #tpu.memory_space<vmem>>, vector<1x128xf32>
    %5 = vector.broadcast %4 : vector<1x128xf32> to vector<16x128xf32>
    %6 = arith.addf %3, %5 : vector<16x128xf32>
    %cst_5 = arith.constant 5.000000e-01 : f32
    %7 = vector.broadcast %cst_5 : f32 to vector<16x128xf32>
    %8 = arith.mulf %7, %6 : vector<16x128xf32>
    %cst_6 = arith.constant 0.707106769 : f32
    %9 = vector.broadcast %cst_6 : f32 to vector<16x128xf32>
    %10 = arith.mulf %6, %9 : vector<16x128xf32>
    %11 = math.erf %10 : vector<16x128xf32>
    %cst_7 = arith.constant 1.000000e+00 : f32
    %12 = vector.broadcast %cst_7 : f32 to vector<16x128xf32>
    %13 = arith.addf %12, %11 : vector<16x128xf32>
    %14 = arith.mulf %8, %13 : vector<16x128xf32>
    %15 = arith.truncf %14 : vector<16x128xf32> to vector<16x128xbf16>
    %c0_8 = arith.constant 0 : index
    %c0_9 = arith.constant 0 : index
    %16 = vector.load %arg4[%c0_8, %c0_9] : memref<128x128xbf16, #tpu.memory_space<vmem>>, vector<128x128xbf16>
    %cst_10 = arith.constant dense<0.000000e+00> : vector<16x128xf32>
    %17 = tpu.matmul %15, %16, %cst_10 {dimension_numbers = #tpu.dot_dimension_numbers<[1], [0], [0], [1], [0, 0, 1, 1], [], []>} : vector<16x128xbf16>, vector<128x128xbf16>, vector<16x128xf32> -> vector<16x128xf32>
    %c0_11 = arith.constant 0 : index
    %c0_12 = arith.constant 0 : index
    %18 = vector.load %arg5[%c0_11, %c0_12] : memref<1x128xf32, #tpu.memory_space<vmem>>, vector<1x128xf32>
    %19 = vector.broadcast %18 : vector<1x128xf32> to vector<16x128xf32>
    %20 = arith.addf %17, %19 : vector<16x128xf32>
    %c0_13 = arith.constant 0 : index
    %c0_14 = arith.constant 0 : index
    %21 = vector.load %arg6[%c0_13, %c0_14] : memref<16x128xf32, #tpu.memory_space<vmem>>, vector<16x128xf32>
    tpu.vector_store %arg6[%c0_13, %c0_14], %20 {strides = array<i32>} : memref<16x128xf32, #tpu.memory_space<vmem>>, vector<16x128xf32>,
    return
  }
  func.func @transform_0(%arg0: i32) -> (i32, i32) {
    %c0_i32 = arith.constant 0 : i32
    %c0_i32_0 = arith.constant 0 : i32
    return %arg0, %c0_i32 : i32, i32
  }
  func.func @transform_1(%arg0: i32) -> (i32, i32) {
    %c0_i32 = arith.constant 0 : i32
    %c0_i32_0 = arith.constant 0 : i32
    %c0_i32_1 = arith.constant 0 : i32
    return %c0_i32, %c0_i32_0 : i32, i32
  }
  func.func @transform_2(%arg0: i32) -> (i32, i32) {
    %c0_i32 = arith.constant 0 : i32
    %c0_i32_0 = arith.constant 0 : i32
    %c0_i32_1 = arith.constant 0 : i32
    return %c0_i32, %c0_i32_0 : i32, i32
  }
  func.func @transform_3(%arg0: i32) -> (i32, i32) {
    %c0_i32 = arith.constant 0 : i32
    %c0_i32_0 = arith.constant 0 : i32
    %c0_i32_1 = arith.constant 0 : i32
    return %c0_i32, %c0_i32_0 : i32, i32
  }
  func.func @transform_4(%arg0: i32) -> (i32, i32) {
    %c0_i32 = arith.constant 0 : i32
    %c0_i32_0 = arith.constant 0 : i32
    %c0_i32_1 = arith.constant 0 : i32
    return %c0_i32, %c0_i32_0 : i32, i32
  }
  func.func @transform_5(%arg0: i32) -> (i32, i32) {
    %c0_i32 = arith.constant 0 : i32
    %c0_i32_0 = arith.constant 0 : i32
    return %arg0, %c0_i32 : i32, i32
  }
}

</mosaic_0001>

<bundles_post_ra>
// kernel: projection_module.1
= control target key start
LH: loop header
LB: loop body
LE: loop exit
PB: predicated region body
PF: predicated region fallthrough
CT: control target
= control target key end

     0   :  { %s605_s0 = inlined_call_operand.vmem [shape: f32[16,256], index: 0, kind: input, shape index: {}]   ;;  %s606_s1 = inlined_call_operand.vmem [shape: bf16[256,128], index: 1, kind: input, shape index: {}]   ;;  %s607_s2 = inlined_call_operand.vmem [shape: f32[1,128], index: 2, kind: input, shape index: {}]   ;;  %s608_s3 = inlined_call_operand.vmem [shape: bf16[128,128], index: 3, kind: input, shape index: {}]   ;;  %s609_s4 = inlined_call_operand.vmem [shape: f32[1,128], index: 4, kind: input, shape index: {}]   ;;  %s610_s5 = inlined_call_operand.hbm [shape: f32[16,128], index: 5, kind: output, shape index: {}]  }
   0x1   :  { %v427_v0 = vld [vmem:[%s606_s1 + $0x78] sm:$0xff]   ;;  %v429_v2 = vld [vmem:[%s606_s1 + $0x70] sm:$0xff]   ;;  %v431_v4 = vld [vmem:[%s606_s1 + $0x68] sm:$0xff]  }
   0x2   :  { %v428_v1 = vld [vmem:[%s606_s1 + $0x38] sm:$0xff]   ;;  %371 = vmatprep.subr.bf16.mxu0 %v427_v0  ;;  %v430_v3 = vld [vmem:[%s606_s1 + $0x30] sm:$0xff]   ;;  %v432_v5 = vld [vmem:[%s606_s1 + $0x28] sm:$0xff]  }
   0x3   :  { %372 = vmatpush3.bf16.msra.mxu0 %v428_v1  ;;  %v433_v6 = vld [vmem:[%s606_s1 + $0x60] sm:$0xff]   ;;  %v435_v8 = vld [vmem:[%s606_s1 + $0x58] sm:$0xff]   ;;  %v437_v10 = vld [vmem:[%s606_s1 + $0x50] sm:$0xff]  }
   0x4   :  { %373 = vmatprep.subr.bf16.mxu0 %v429_v2  ;;  %v434_v7 = vld [vmem:[%s606_s1 + $0x20] sm:$0xff]   ;;  %v436_v9 = vld [vmem:[%s606_s1 + $0x18] sm:$0xff]   ;;  %v23_v11 = vld [vmem:[%s605_s0 + $0x8] sm:$0xff] }
   0x5   :  { %v25_v12 = vld [vmem:[%s605_s0 + $0x18] sm:$0xff]  ;;  %v438_v13 = vld [vmem:[%s606_s1 + $0x10] sm:$0xff]   ;;  %v439_v15 = vld [vmem:[%s606_s1 + $0x48] sm:$0xff]  }
   0x6   :  { %v27_v14 = vpack.c.bf16 %v25_v12, %v23_v11 }
   0x7   :  { %374 = vmatpush3.bf16.msra.mxu0 %v430_v3 }
   0x8   :  { %375 = vmatprep.subr.bf16.mxu0 %v431_v4  ;;  %195 = vmatprep.mubr.bf16.mxu0 %v27_v14 }
   0xb   :  { %376 = vmatpush3.bf16.msra.mxu0 %v432_v5 }
   0xc   :  { %377 = vmatprep.subr.bf16.mxu0 %v433_v6 }
   0xf   :  { %378 = vmatpush3.bf16.msra.mxu0 %v434_v7 }
  0x10   :  { %379 = vmatprep.subr.bf16.mxu0 %v435_v8 }
  0x13   :  { %380 = vmatpush3.bf16.msra.mxu0 %v436_v9 }
  0x14   :  { %381 = vmatprep.subr.bf16.mxu0 %v437_v10 }
  0x15   :  { %10 = vsyncpa [#allocation3], 0  ;;  %v440_v16 = vld [vmem:[%s606_s1 + $0x8] sm:$0xff]   ;;  %v441_v17 = vld [vmem:[%s606_s1 + $0x40] sm:$0xff]   ;;  %v477_v23 = vmov 0.0   ;;  %vm478_vm0 = vmmov 0  }
  0x16   :  { %v442_v18 = vld [vmem:[%s606_s1] sm:$0xff]   ;;  %v24_v20 = vld [vmem:[%s605_s0 + $0x10] sm:$0xff]  ;;  %v443_v22 = vld [vmem:[%s608_s3 + $0x38] sm:$0xff]   ;;  %402 = vmatprep.subr.bf16.mxu1 %v477_v23  ;;  %418 = vmatprep.mubr.msk.bf16.mxu1 %vm478_vm0, %v477_v23  ;;  %s479_s24 = smov [#allocation2]  }
  0x17   :  { %382 = vmatpush3.bf16.msra.mxu0 %v438_v13  ;;  %v22_v19 = vld [vmem:[%s605_s0] sm:$0xff]  ;;  %403 = vmatpush3.bf16.msra.mxu1 %v443_v22  ;;  %v444_v24 = vld [vmem:[%s608_s3 + $0x30] sm:$0xff]   ;;  %v445_v25 = vld [vmem:[%s608_s3 + $0x28] sm:$0xff]   ;;  %s334_s25 = sshll.u32 %s479_s24, 4  ;;  %s335_s25 = int_to_ptr.vmem [resolvable:$true] %s334_s25 }
  0x18   :  { %383 = vmatprep.subr.bf16.mxu0 %v439_v15  ;;  %v26_v21 = vpack.c.bf16 %v24_v20, %v22_v19  ;;  %404 = vmatprep.subr.bf16.mxu1 %v477_v23  ;;  %v446_v26 = vld [vmem:[%s608_s3 + $0x20] sm:$0xff]   ;;  %v447_v27 = vld [vmem:[%s608_s3 + $0x18] sm:$0xff]   ;;  %v448_v28 = vld [vmem:[%s608_s3 + $0x10] sm:$0xff]   ;;  %s455_s26 = scalar_lea.vmem %s335_s25, 256  ;;  %p460_p1 = scmp.lt.s32.totalorder %s335_s25, %s335_s25 }
  0x19   :  { %v449_v29 = vld [vmem:[%s608_s3 + $0x8] sm:$0xff]   ;;  %v450_v30 = vld [vmem:[%s608_s3] sm:$0xff]   ;;  %p456_p0 = scmp.ne.s32.totalorder %s335_s25, %s455_s26  ;;  %p461_p2 = scmp.lt.s32.totalorder %s455_s26, %s455_s26 }
  0x1a   :  { %v345_v32 = vld [vmem:[%s607_s2] ss:$0 sm:$0xff] }
  0x1b   :  { %384 = vmatpush3.bf16.msra.mxu0 %v440_v16  ;;  %405 = vmatpush3.bf16.msra.mxu1 %v444_v24  ;;  %v362_v51 = vld [vmem:[%s609_s4] ss:$0 sm:$0xff]  ;;  %p462_p3 = por %p461_p2, %p460_p1 }
  0x1c   :  { %385 = vmatprep.subr.bf16.mxu0 %v441_v17  ;;  %406 = vmatprep.subr.bf16.mxu1 %v477_v23 }
  0x1d   :  { %p463_p4 = pnand %p462_p3, %p456_p0 }
  0x1f   :  { %386 = vmatpush3.bf16.msra.mxu0 %v442_v18  ;;  %407 = vmatpush3.bf16.msra.mxu1 %v445_v25 }
  0x20   :  { %408 = vmatprep.subr.bf16.mxu1 %v477_v23 }
  0x22   :  { %196 = vmatmul.mubr.bf16.vlgmr.msra.gmra.mxu0 %v26_v21 }
  0x23   :  { %409 = vmatpush3.bf16.msra.mxu1 %v446_v26 }
  0x24   :  { %410 = vmatprep.subr.bf16.mxu1 %v477_v23 }
  0x27   :  { %411 = vmatpush3.bf16.msra.mxu1 %v447_v27 }
  0x28   :  { %412 = vmatprep.subr.bf16.mxu1 %v477_v23 }
  0x2b   :  { %413 = vmatpush3.bf16.msra.mxu1 %v448_v28 }
  0x2c   :  { %414 = vmatprep.subr.bf16.mxu1 %v477_v23 }
  0x2f   :  { %415 = vmatpush3.bf16.msra.mxu1 %v449_v29 }
  0x30   :  { %416 = vmatprep.subr.bf16.mxu1 %v477_v23 }
  0x33   :  { %417 = vmatpush3.bf16.msra.mxu1 %v450_v30 }
  0xe2   :  { %v387_v31 = vpop.f32.mrf.mxu0 }
  0xe4   :  { %v388_v33 = vpop.f32.mrf.mxu0 }
  0xe5   :  { %v389_v34 = vadd.f32 %v388_v33, %v387_v31 }
  0xe6   :  { %v390_v35 = vpop.f32.mrf.mxu0 }
  0xe7   :  { %v198_v36 = vadd.f32 %v389_v34, %v345_v32 }
  0xe8   :  { %v391_v37 = vpop.f32.mrf.mxu0 }
  0xe9   :  { %v206_v38 = vmul.f32 0.70710677, %v198_v36  ;;  %v392_v39 = vadd.f32 %v391_v37, %v390_v35  ;;  %v204_v45 = vmul.f32 0.5, %v198_v36 }
  0xeb   :  { %451 = verf.f32 %v206_v38  ;;  %v201_v40 = vadd.f32 %v392_v39, %v345_v32 }
  0xed   :  { %v207_v41 = vmul.f32 0.70710677, %v201_v40  ;;  %v205_v46 = vmul.f32 0.5, %v201_v40 }
  0xef   :  { %453 = verf.f32 %v207_v41 }
  0xf8   :  { %v452_v42 = vpop.eup %451 }
  0xf9   :  { %v210_v43 = vadd.f32 1.0, %v452_v42 }
  0xfb   :  { %v212_v48 = vmul.f32 %v210_v43, %v204_v45 }
  0xfc   :  { %v454_v44 = vpop.eup %453 }
  0xfd   :  { %v211_v47 = vadd.f32 1.0, %v454_v44 }
  0xff   :  { %v213_v49 = vmul.f32 %v211_v47, %v205_v46 }
 0x101   :  { %v214_v50 = vpack.c.bf16 %v213_v49, %v212_v48 }
 0x103   :  { %419 = vmatmul.mubr.bf16.vlgmr.msra.gmra.mxu1 %v214_v50 }
 0x1c3   :  { %v320_v52 = vpop.f32.mrf.mxu1 }
 0x1c4   :  { %v321_v53 = vadd.f32 %v362_v51, %v320_v52 }
 0x1c5   :  { %v420_v54 = vpop.f32.mrf.mxu1 }
 0x1c6   :  { %327 = vst [vmem:[#allocation2] sm:$0xff] %v321_v53 }
 0x1c7   :  { %v323_v55 = vpop.f32.mrf.mxu1 }
 0x1c8   :  { %v324_v56 = vadd.f32 %v362_v51, %v323_v55 }
 0x1c9   :  { %v421_v57 = vpop.f32.mrf.mxu1 }
 0x1ca   :  { %328 = vst [vmem:[#allocation2 + $0x8] sm:$0xff] %v324_v56 }
 0x1cb   :  { %466 = shalt.err (!%p463_p4)
}
 0x1cc   :  { %s480_s27 = smov 128   ;;  %s481_s4 = smov 8  }
 0x1cd   :  { %340 = dma.vmem_to_hbm [thread:$0]  %s335_s25, 256, %s610_s5, [#allocation3], %s480_s27, %s480_s27, %s481_s4  }
 0x1ce   :  { %475 = dma.done.wait [#allocation3], 256  }
 0x1cf   :  { %476 = vsyncadd [#allocation3], 4294967040 }
 0x1d0   :  { %344 = vsyncpa [#allocation3], 1 }

</bundles_post_ra>
